<compile_context>
chip_gen: v5e
topology: v5e:2x2
jax: 0.10.0
libtpu: 0.0.40
codegen_flags: <defaults>
</compile_context>

<pallas_src>
import jax
import jax.numpy as jnp
from jax.experimental import pallas as pl
from jax.experimental.pallas import tpu as pltpu

# ---- problem sizes (from the module) ----------------------------------------
N, C_IN, H, W = 1, 3, 64, 64
C_OUT, KH, KW = 8, 5, 5
STRIDE, PAD = 2, 1
OH = (H + 2 * PAD - KH) // STRIDE + 1        # 31
OW = (W + 2 * PAD - KW) // STRIDE + 1        # 31

K_TAPS = C_IN * KH * KW                      # 75 contraction rows (c, kh, kw)
K_BIAS = K_TAPS + 1                          # 76: extra ones-row carries the bias
K_PAD = 80                                   # multiple of 16 (bf16 sublane packing)
Q = OH * OW                                  # 961 output pixels (q = oh*31 + ow)
Q_PAD = 1024                                 # 8*128 lane-dense output columns


# ---- Pallas kernel: single MXU matmul + relu ---------------------------------
def conv_matmul_kernel(w_ref, rhs_ref, o_ref):
    # w_ref  : (C_OUT, K_PAD)  bf16 weights; column K_TAPS holds (bias - 0.5)
    # rhs_ref: (K_PAD, Q_PAD)  bf16 im2col patches; row K_TAPS is all-ones
    # o_ref  : (C_OUT, Q_PAD)  f32 lane-dense output
    acc = jnp.dot(w_ref[...], rhs_ref[...],
                  preferred_element_type=jnp.float32)     # one MXU pass, f32 acc
    o_ref[...] = jnp.maximum(acc, 0.0)                    # relu, unmasked stores


def conv_fused(w_packed, rhs):
    return pl.pallas_call(
        conv_matmul_kernel,
        out_shape=jax.ShapeDtypeStruct((C_OUT, Q_PAD), jnp.float32),
        in_specs=[
            pl.BlockSpec(memory_space=pltpu.MemorySpace.VMEM),
            pl.BlockSpec(memory_space=pltpu.MemorySpace.VMEM),
        ],
        out_specs=pl.BlockSpec(memory_space=pltpu.MemorySpace.VMEM),
    )(w_packed, rhs)


# ---- wrapper -----------------------------------------------------------------
def model_forward(x_nchw, weight, bias):
    # im2col in the wrapper (fully fused by XLA under jit):
    #   rhs[k, q] = xpad[c, kh + 2*oh, kw + 2*ow]   with k = c*25 + kh*5 + kw,
    #                                                     q = oh*31 + ow
    xp = jnp.pad(x_nchw[0], ((0, 0), (PAD, PAD), (PAD, PAD)))            # (3, 66, 66)
    taps = jnp.stack(
        [jnp.stack([xp[:, kh:kh + STRIDE * OH:STRIDE, kw:kw + STRIDE * OW:STRIDE]
                    for kw in range(KW)], axis=1)
         for kh in range(KH)], axis=1)                                   # (3,5,5,31,31)
    rhs = taps.reshape(K_TAPS, Q)                                        # (75, 961)
    rhs = jnp.concatenate([rhs, jnp.ones((1, Q), rhs.dtype)], axis=0)    # bias row
    rhs = jnp.pad(rhs, ((0, K_PAD - K_BIAS), (0, Q_PAD - Q)))            # (80, 1024)
    rhs = rhs.astype(jnp.bfloat16)

    w = weight.reshape(C_OUT, K_TAPS)                                    # (8, 75)
    w = jnp.concatenate([w, (bias - 0.5)[:, None]], axis=1)              # fold bias-0.5
    w = jnp.pad(w, ((0, 0), (0, K_PAD - K_BIAS))).astype(jnp.bfloat16)   # (8, 80)

    out_flat = conv_fused(w, rhs)                                        # (8, 1024) f32
    return out_flat[:, :Q].reshape(C_OUT, OH, OW)                        # == squeeze(v3, 0)


# ---- pure-JAX reference (independent layout path, high precision) ------------
def reference(x_nchw, weight, bias):
    xp = jnp.pad(x_nchw[0], ((0, 0), (PAD, PAD), (PAD, PAD)))
    taps = [[xp[:, kh:kh + STRIDE * OH:STRIDE, kw:kw + STRIDE * OW:STRIDE]
             for kw in range(KW)] for kh in range(KH)]
    pat = jnp.stack([jnp.stack(row, axis=1) for row in taps], axis=1)    # (3,5,5,31,31)
    conv = jnp.einsum('ockl,cklij->oij', weight, pat,
                      precision=jax.lax.Precision.HIGHEST)
    return jnp.maximum(conv + bias[:, None, None] - 0.5, 0.0)


if __name__ == "__main__":
    key = jax.random.PRNGKey(0)
    kx, kw_, kb = jax.random.split(key, 3)

    x1 = jax.random.normal(kx, (N, C_IN, H, W), dtype=jnp.float32)
    fan_in = C_IN * KH * KW
    bound = 1.0 / (fan_in ** 0.5)
    weight = jax.random.uniform(kw_, (C_OUT, C_IN, KH, KW),
                                minval=-bound, maxval=bound, dtype=jnp.float32)
    bias = jax.random.uniform(kb, (C_OUT,), minval=-bound, maxval=bound,
                              dtype=jnp.float32)

    out = jax.jit(model_forward)(x1, weight, bias)
    jax.block_until_ready(out)
    assert out.shape == (C_OUT, OH, OW), out.shape

    ref = reference(x1, weight, bias)
    err = float(jnp.max(jnp.abs(out - ref)))
    # bf16 MXU inputs (f32 accumulation): expected max-abs error ~1e-3.
    assert err < 2e-2, f"max abs error vs reference: {err}"

    print("KERNEL_OK")
</pallas_src>

<mosaic_0001>
module attributes {stable_mosaic.version = 11 : i64} {
  func.func @conv_matmul_kernel(%arg0: memref<8x80xbf16, #tpu.memory_space<vmem>>, %arg1: memref<80x1024xbf16, #tpu.memory_space<vmem>>, %arg2: memref<8x1024xf32, #tpu.memory_space<vmem>>) attributes {dimension_semantics = [], scalar_prefetch = 0 : i64, scratch_operands = 0 : i64, tpu.core_type = #tpu.core_type<tc>} {
    %c0 = arith.constant 0 : index
    %c0_0 = arith.constant 0 : index
    %0 = vector.load %arg0[%c0, %c0_0] : memref<8x80xbf16, #tpu.memory_space<vmem>>, vector<8x80xbf16>
    %c0_1 = arith.constant 0 : index
    %c0_2 = arith.constant 0 : index
    %1 = vector.load %arg1[%c0_1, %c0_2] : memref<80x1024xbf16, #tpu.memory_space<vmem>>, vector<80x1024xbf16>
    %cst = arith.constant dense<0.000000e+00> : vector<8x1024xf32>
    %2 = tpu.matmul %0, %1, %cst {dimension_numbers = #tpu.dot_dimension_numbers<[1], [0], [0], [1], [0, 0, 1, 1], [], []>} : vector<8x80xbf16>, vector<80x1024xbf16>, vector<8x1024xf32> -> vector<8x1024xf32>
    %cst_3 = arith.constant 0.000000e+00 : f32
    %3 = vector.broadcast %cst_3 : f32 to vector<8x1024xf32>
    %4 = arith.maximumf %2, %3 : vector<8x1024xf32>
    %c0_4 = arith.constant 0 : index
    %c0_5 = arith.constant 0 : index
    %5 = vector.load %arg2[%c0_4, %c0_5] : memref<8x1024xf32, #tpu.memory_space<vmem>>, vector<8x1024xf32>
    tpu.vector_store %arg2[%c0_4, %c0_5], %4 {strides = array<i32>} : memref<8x1024xf32, #tpu.memory_space<vmem>>, vector<8x1024xf32>,
    return
  }
}

</mosaic_0001>

<bundles_post_ra>
// kernel: model_forward.1
= control target key start
LH: loop header
LB: loop body
LE: loop exit
PB: predicated region body
PF: predicated region fallthrough
CT: control target
= control target key end

     0   :  { %vm253_vm0 = vcmask 654336   ;;  %s889_s1 = inlined_call_operand.vmem [shape: bf16[80,1024], index: 1, kind: input, shape index: {}]   ;;  %s890_s0 = inlined_call_operand.vmem [shape: bf16[8,80], index: 0, kind: input, shape index: {}]   ;;  %s891_s2 = inlined_call_operand.vmem [shape: f32[8,1024], index: 2, kind: output, shape index: {}]  }
   0x1   :  { %v511_v0 = vld [vmem:[%s889_s1 + $0x100] sm:$0xf]  ;;  %v581_v2 = vld [vmem:[%s889_s1 + $0x104] sm:$0xf]  ;;  %v519_v5 = vld [vmem:[%s889_s1 + $0x108] sm:$0xf] }
   0x2   :  { %v585_v1 = vld [vmem:[%s889_s1 + $0x11c] sm:$0xf0]  ;;  %v513_v4 = vld [vmem:[%s889_s1 + $0x120] sm:$0xf0]  ;;  %v586_v6 = vld [vmem:[%s889_s1 + $0x124] sm:$0xf0] }
   0x3   :  { %v512_v3 = vor.u32 %v585_v1, %v511_v0  ;;  %v516_v7 = vor.u32 %v581_v2, %v513_v4  ;;  %v520_v8 = vor.u32 %v586_v6, %v519_v5  ;;  %v582_v9 = vld [vmem:[%s889_s1 + $0x10c] sm:$0xf]  ;;  %v479_v11 = vld [vmem:[%s889_s1 + $0xc0] sm:$0xf]  ;;  %v573_v14 = vld [vmem:[%s889_s1 + $0xc4] sm:$0xf] }
   0x4   :  { %v521_v10 = vld [vmem:[%s889_s1 + $0x128] sm:$0xf0]  ;;  %v577_v13 = vld [vmem:[%s889_s1 + $0xdc] sm:$0xf0]  ;;  %v481_v15 = vld [vmem:[%s889_s1 + $0xe0] sm:$0xf0] }
   0x5   :  { %260 = vmatpush.bf16.msra.mxu0 %v512_v3  ;;  %v524_v12 = vor.u32 %v582_v9, %v521_v10  ;;  %273 = vmatpush.bf16.msra.mxu1 %v516_v7  ;;  %v480_v16 = vor.u32 %v577_v13, %v479_v11  ;;  %v484_v17 = vor.u32 %v573_v14, %v481_v15  ;;  %v487_v18 = vld [vmem:[%s889_s1 + $0xc8] sm:$0xf]  ;;  %v574_v20 = vld [vmem:[%s889_s1 + $0xcc] sm:$0xf]  ;;  %v447_v23 = vld [vmem:[%s889_s1 + $0x80] sm:$0xf] }
   0x6   :  { %286 = vmatpush.bf16.msra.mxu2 %v520_v8  ;;  %v578_v19 = vld [vmem:[%s889_s1 + $0xe4] sm:$0xf0]  ;;  %v489_v22 = vld [vmem:[%s889_s1 + $0xe8] sm:$0xf0]  ;;  %v569_v24 = vld [vmem:[%s889_s1 + $0x9c] sm:$0xf0] }
   0x7   :  { %299 = vmatpush.bf16.msra.mxu3 %v524_v12  ;;  %v488_v21 = vor.u32 %v578_v19, %v487_v18  ;;  %v492_v25 = vor.u32 %v574_v20, %v489_v22  ;;  %v565_v26 = vld [vmem:[%s889_s1 + $0x84] sm:$0xf]  ;;  %v455_v28 = vld [vmem:[%s889_s1 + $0x88] sm:$0xf]  ;;  %v448_v29 = vor.u32 %v569_v24, %v447_v23  ;;  %v566_v31 = vld [vmem:[%s889_s1 + $0x8c] sm:$0xf] }
   0x8   :  { %v449_v27 = vld [vmem:[%s889_s1 + $0xa0] sm:$0xf0]  ;;  %v570_v30 = vld [vmem:[%s889_s1 + $0xa4] sm:$0xf0]  ;;  %v457_v32 = vld [vmem:[%s889_s1 + $0xa8] sm:$0xf0] }
   0x9   :  { %261 = vmatpush.bf16.msra.mxu0 %v480_v16  ;;  %274 = vmatpush.bf16.msra.mxu1 %v484_v17  ;;  %v452_v33 = vor.u32 %v565_v26, %v449_v27  ;;  %v456_v34 = vor.u32 %v570_v30, %v455_v28  ;;  %v415_v35 = vld [vmem:[%s889_s1 + $0x40] sm:$0xf]  ;;  %v557_v37 = vld [vmem:[%s889_s1 + $0x44] sm:$0xf]  ;;  %v460_v38 = vor.u32 %v566_v31, %v457_v32  ;;  %v423_v40 = vld [vmem:[%s889_s1 + $0x48] sm:$0xf] }
   0xa   :  { %287 = vmatpush.bf16.msra.mxu2 %v488_v21  ;;  %v561_v36 = vld [vmem:[%s889_s1 + $0x5c] sm:$0xf0]  ;;  %v417_v39 = vld [vmem:[%s889_s1 + $0x60] sm:$0xf0]  ;;  %v562_v41 = vld [vmem:[%s889_s1 + $0x64] sm:$0xf0] }
   0xb   :  { %300 = vmatpush.bf16.msra.mxu3 %v492_v25  ;;  %v558_v42 = vld [vmem:[%s889_s1 + $0x4c] sm:$0xf]  ;;  %v416_v44 = vor.u32 %v561_v36, %v415_v35  ;;  %v383_v45 = vld [vmem:[%s889_s1] sm:$0xf]  ;;  %v420_v47 = vor.u32 %v557_v37, %v417_v39  ;;  %v424_v48 = vor.u32 %v562_v41, %v423_v40  ;;  %v549_v49 = vld [vmem:[%s889_s1 + $0x4] sm:$0xf] }
   0xc   :  { %v425_v43 = vld [vmem:[%s889_s1 + $0x68] sm:$0xf0]  ;;  %v553_v46 = vld [vmem:[%s889_s1 + $0x1c] sm:$0xf0]  ;;  %v385_v50 = vld [vmem:[%s889_s1 + $0x20] sm:$0xf0] }
   0xd   :  { %262 = vmatpush.bf16.msra.mxu0 %v448_v29  ;;  %275 = vmatpush.bf16.msra.mxu1 %v452_v33  ;;  %v391_v51 = vld [vmem:[%s889_s1 + $0x8] sm:$0xf]  ;;  %v428_v52 = vor.u32 %v558_v42, %v425_v43  ;;  %v550_v54 = vld [vmem:[%s889_s1 + $0xc] sm:$0xf]  ;;  %v527_v56 = vld [vmem:[%s889_s1 + $0x110] sm:$0xf]  ;;  %v384_v59 = vor.u32 %v553_v46, %v383_v45  ;;  %v388_v63 = vor.u32 %v549_v49, %v385_v50 }
   0xe   :  { %288 = vmatpush.bf16.msra.mxu2 %v456_v34  ;;  %v554_v53 = vld [vmem:[%s889_s1 + $0x24] sm:$0xf0]  ;;  %v393_v55 = vld [vmem:[%s889_s1 + $0x28] sm:$0xf0]  ;;  %v587_v57 = vld [vmem:[%s889_s1 + $0x12c] sm:$0xf0] }
   0xf   :  { %301 = vmatpush.bf16.msra.mxu3 %v460_v38  ;;  %v583_v58 = vld [vmem:[%s889_s1 + $0x114] sm:$0xf]  ;;  %v535_v61 = vld [vmem:[%s889_s1 + $0x118] sm:$0xf]  ;;  %v392_v0 = vor.u32 %v554_v53, %v391_v51  ;;  %v584_v1 = vld [vmem:[%s889_s1 + $0x11c] sm:$0xf]  ;;  %v396_v3 = vor.u32 %v550_v54, %v393_v55  ;;  %v528_v4 = vor.u32 %v587_v57, %v527_v56 }
  0x10   :  { %v529_v60 = vld [vmem:[%s889_s1 + $0x130] sm:$0xf0]  ;;  %v588_v62 = vld [vmem:[%s889_s1 + $0x134] sm:$0xf0]  ;;  %v537_v2 = vld [vmem:[%s889_s1 + $0x138] sm:$0xf0] }
  0x11   :  { %263 = vmatpush.bf16.msra.mxu0 %v416_v44  ;;  %276 = vmatpush.bf16.msra.mxu1 %v420_v47  ;;  %v532_v5 = vor.u32 %v583_v58, %v529_v60  ;;  %v536_v6 = vor.u32 %v588_v62, %v535_v61  ;;  %v495_v7 = vld [vmem:[%s889_s1 + $0xd0] sm:$0xf]  ;;  %v575_v9 = vld [vmem:[%s889_s1 + $0xd4] sm:$0xf]  ;;  %v540_v10 = vor.u32 %v584_v1, %v537_v2  ;;  %v503_v12 = vld [vmem:[%s889_s1 + $0xd8] sm:$0xf] }
  0x12   :  { %289 = vmatpush.bf16.msra.mxu2 %v424_v48  ;;  %v579_v8 = vld [vmem:[%s889_s1 + $0xec] sm:$0xf0]  ;;  %v497_v11 = vld [vmem:[%s889_s1 + $0xf0] sm:$0xf0]  ;;  %v580_v13 = vld [vmem:[%s889_s1 + $0xf4] sm:$0xf0] }
  0x13   :  { %302 = vmatpush.bf16.msra.mxu3 %v428_v52  ;;  %v769_v14 = vld [vmem:[%s890_s0] sm:$0xf]  ;;  %v576_v15 = vld [vmem:[%s889_s1 + $0xdc] sm:$0xf]  ;;  %v496_v17 = vor.u32 %v579_v8, %v495_v7  ;;  %v500_v18 = vor.u32 %v575_v9, %v497_v11  ;;  %v504_v19 = vor.u32 %v580_v13, %v503_v12  ;;  %v463_v20 = vld [vmem:[%s889_s1 + $0x90] sm:$0xf] }
  0x14   :  { %v505_v16 = vld [vmem:[%s889_s1 + $0xf8] sm:$0xf0]  ;;  %v571_v21 = vld [vmem:[%s889_s1 + $0xac] sm:$0xf0]  ;;  %v567_v22 = vld [vmem:[%s889_s1 + $0x94] sm:$0xf] }
  0x15   :  { %264 = vmatpush.bf16.msra.mxu0 %v384_v59  ;;  %277 = vmatpush.bf16.msra.mxu1 %v388_v63  ;;  %v508_v23 = vor.u32 %v576_v15, %v505_v16  ;;  %v465_v24 = vld [vmem:[%s889_s1 + $0xb0] sm:$0xf0]  ;;  %v471_v25 = vld [vmem:[%s889_s1 + $0x98] sm:$0xf]  ;;  %v568_v27 = vld [vmem:[%s889_s1 + $0x9c] sm:$0xf]  ;;  %v464_v29 = vor.u32 %v571_v21, %v463_v20 }
  0x16   :  { %290 = vmatpush.bf16.msra.mxu2 %v392_v0  ;;  %v572_v26 = vld [vmem:[%s889_s1 + $0xb4] sm:$0xf0]  ;;  %v473_v28 = vld [vmem:[%s889_s1 + $0xb8] sm:$0xf0]  ;;  %v468_v30 = vor.u32 %v567_v22, %v465_v24  ;;  %v431_v32 = vld [vmem:[%s889_s1 + $0x50] sm:$0xf] }
  0x17   :  { %303 = vmatpush.bf16.msra.mxu3 %v396_v3  ;;  %v472_v31 = vor.u32 %v572_v26, %v471_v25  ;;  %v563_v33 = vld [vmem:[%s889_s1 + $0x6c] sm:$0xf0]  ;;  %v559_v34 = vld [vmem:[%s889_s1 + $0x54] sm:$0xf]  ;;  %v476_v35 = vor.u32 %v568_v27, %v473_v28  ;;  %v439_v37 = vld [vmem:[%s889_s1 + $0x58] sm:$0xf] }
  0x18   :  { %541 = vmatmul.msk.bf16.vlgmr.msra.gmra.mxu0 %vm253_vm0, %v769_v14  ;;  %542 = vmatmul.msk.bf16.vlgmr.msra.gmra.mxu1 %vm253_vm0, %v769_v14  ;;  %v433_v36 = vld [vmem:[%s889_s1 + $0x70] sm:$0xf0]  ;;  %v564_v38 = vld [vmem:[%s889_s1 + $0x74] sm:$0xf0]  ;;  %v560_v39 = vld [vmem:[%s889_s1 + $0x5c] sm:$0xf]  ;;  %v432_v41 = vor.u32 %v563_v33, %v431_v32 }
  0x19   :  { %312 = vmatpush.bf16.msrb.mxu0 %v528_v4  ;;  %325 = vmatpush.bf16.msrb.mxu1 %v532_v5  ;;  %v441_v40 = vld [vmem:[%s889_s1 + $0x78] sm:$0xf0]  ;;  %v436_v42 = vor.u32 %v559_v34, %v433_v36  ;;  %v440_v43 = vor.u32 %v564_v38, %v439_v37  ;;  %v399_v44 = vld [vmem:[%s889_s1 + $0x10] sm:$0xf]  ;;  %v551_v46 = vld [vmem:[%s889_s1 + $0x14] sm:$0xf] }
  0x1a   :  { %338 = vmatpush.bf16.msrb.mxu2 %v536_v6  ;;  %544 = vmatmul.msk.bf16.vlgmr.msra.gmra.mxu3 %vm253_vm0, %v769_v14  ;;  %v555_v45 = vld [vmem:[%s889_s1 + $0x2c] sm:$0xf0]  ;;  %v444_v47 = vor.u32 %v560_v39, %v441_v40  ;;  %v401_v48 = vld [vmem:[%s889_s1 + $0x30] sm:$0xf0]  ;;  %v407_v49 = vld [vmem:[%s889_s1 + $0x18] sm:$0xf] }
  0x1b   :  { %351 = vmatpush.bf16.msrb.mxu3 %v540_v10  ;;  %543 = vmatmul.msk.bf16.vlgmr.msra.gmra.mxu2 %vm253_vm0, %v769_v14  ;;  %v556_v50 = vld [vmem:[%s889_s1 + $0x34] sm:$0xf0]  ;;  %v552_v51 = vld [vmem:[%s889_s1 + $0x1c] sm:$0xf]  ;;  %v400_v53 = vor.u32 %v555_v45, %v399_v44  ;;  %v404_v54 = vor.u32 %v551_v46, %v401_v48 }
  0x1c   :  { %v409_v52 = vld [vmem:[%s889_s1 + $0x38] sm:$0xf0]  ;;  %v408_v55 = vor.u32 %v556_v50, %v407_v49 }
  0x1d   :  { %313 = vmatpush.bf16.msrb.mxu0 %v496_v17  ;;  %326 = vmatpush.bf16.msrb.mxu1 %v500_v18  ;;  %v412_v56 = vor.u32 %v552_v51, %v409_v52 }
  0x1e   :  { %339 = vmatpush.bf16.msrb.mxu2 %v504_v19 }
  0x1f   :  { %352 = vmatpush.bf16.msrb.mxu3 %v508_v23 }
  0x21   :  { %314 = vmatpush.bf16.msrb.mxu0 %v464_v29  ;;  %327 = vmatpush.bf16.msrb.mxu1 %v468_v30 }
  0x22   :  { %340 = vmatpush.bf16.msrb.mxu2 %v472_v31 }
  0x23   :  { %353 = vmatpush.bf16.msrb.mxu3 %v476_v35 }
  0x25   :  { %315 = vmatpush.bf16.msrb.mxu0 %v432_v41  ;;  %328 = vmatpush.bf16.msrb.mxu1 %v436_v42 }
  0x26   :  { %341 = vmatpush.bf16.msrb.mxu2 %v440_v43 }
  0x27   :  { %354 = vmatpush.bf16.msrb.mxu3 %v444_v47 }
  0x29   :  { %316 = vmatpush.bf16.msrb.mxu0 %v400_v53  ;;  %329 = vmatpush.bf16.msrb.mxu1 %v404_v54 }
  0x2a   :  { %342 = vmatpush.bf16.msrb.mxu2 %v408_v55 }
  0x2b   :  { %355 = vmatpush.bf16.msrb.mxu3 %v412_v56 }
  0x2c   :  { %545 = vmatmul.msk.bf16.vlgmr.msrb.gmra.mxu0 %vm253_vm0, %v769_v14  ;;  %546 = vmatmul.msk.bf16.vlgmr.msrb.gmra.mxu1 %vm253_vm0, %v769_v14 }
  0x2d   :  { %547 = vmatmul.msk.bf16.vlgmr.msrb.gmra.mxu2 %vm253_vm0, %v769_v14 }
  0x2e   :  { %548 = vmatmul.msk.bf16.vlgmr.msrb.gmra.mxu3 %vm253_vm0, %v769_v14 }
  0x95   :  { %v266_v57 = vpop.f32.mrf.mxu0  ;;  %v279_v59 = vpop.f32.mrf.mxu1 }
  0x96   :  { %v361_v58 = vmax.f32 %v266_v57, 0.0  ;;  %v362_v60 = vmax.f32 %v279_v59, 0.0 }
  0x98   :  { %369 = vst [vmem:[%s891_s2] sm:$0xff] %v361_v58 }
  0x99   :  { %370 = vst [vmem:[%s891_s2 + $0x8] sm:$0xff] %v362_v60 }
  0x9d   :  { %v305_v63 = vpop.f32.mrf.mxu3  ;;  %v268_v0 = vpop.f32.mrf.mxu0 }
  0x9e   :  { %v292_v61 = vpop.f32.mrf.mxu2  ;;  %v364_v1 = vmax.f32 %v305_v63, 0.0  ;;  %v281_v2 = vpop.f32.mrf.mxu1 }
  0x9f   :  { %v363_v62 = vmax.f32 %v292_v61, 0.0 }
  0xa0   :  { %372 = vst [vmem:[%s891_s2 + $0x18] sm:$0xff] %v364_v1 }
  0xa1   :  { %371 = vst [vmem:[%s891_s2 + $0x10] sm:$0xff] %v363_v62 }
  0xa5   :  { %v307_v4 = vpop.f32.mrf.mxu3 }
  0xa6   :  { %v294_v3 = vpop.f32.mrf.mxu2 }
  0xa9   :  { %v318_v5 = vpop.f32.mrf.mxu0  ;;  %v331_v7 = vpop.f32.mrf.mxu1 }
  0xaa   :  { %v365_v6 = vmax.f32 %v318_v5, 0.0  ;;  %v366_v8 = vmax.f32 %v331_v7, 0.0 }
  0xac   :  { %373 = vst [vmem:[%s891_s2 + $0x20] sm:$0xff] %v365_v6 }
  0xad   :  { %374 = vst [vmem:[%s891_s2 + $0x28] sm:$0xff] %v366_v8 }
  0xb0   :  { %v344_v9 = vpop.f32.mrf.mxu2 }
  0xb1   :  { %v367_v10 = vmax.f32 %v344_v9, 0.0  ;;  %v357_v11 = vpop.f32.mrf.mxu3  ;;  %v320_v12 = vpop.f32.mrf.mxu0 }
  0xb2   :  { %v368_v13 = vmax.f32 %v357_v11, 0.0  ;;  %v333_v14 = vpop.f32.mrf.mxu1 }
  0xb3   :  { %375 = vst [vmem:[%s891_s2 + $0x30] sm:$0xff] %v367_v10 }
  0xb4   :  { %376 = vst [vmem:[%s891_s2 + $0x38] sm:$0xff] %v368_v13 }
  0xb8   :  { %v346_v15 = vpop.f32.mrf.mxu2 }
  0xb9   :  { %v359_v16 = vpop.f32.mrf.mxu3 }

</bundles_post_ra>
